<compile_context>
chip_gen: v5e
topology: v5e:2x2
jax: 0.10.0
libtpu: 0.0.40
codegen_flags: <defaults>
</compile_context>

<pallas_src>
import functools

import jax
import jax.numpy as jnp
from jax import lax
from jax.experimental import pallas as pl
from jax.experimental.pallas import tpu as pltpu

EPS = 1e-5  # torch.nn.InstanceNorm2d default eps
_CHUNK_TARGET_ELEMS = 128 * 1024  # ~512 KiB of live f32 chunk per streamed step


# ---------------------------------------------------------------------------
# Generation-aware sizing
# ---------------------------------------------------------------------------
def _vmem_capacity_bytes():
    try:
        cap = int(pltpu.get_tpu_info().vmem_capacity_bytes)
    except Exception:
        cap = 64 << 20  # conservative (v7x-sized) default
    return min(max(cap, 32 << 20), 128 << 20)


def _tile_target_bytes(vmem_cap):
    # ~14 MiB tiles on v5e/v6e (128 MiB VMEM), ~7 MiB on v7x (64 MiB VMEM);
    # double-buffered in + out = 4x tile stays well under the scoped limit.
    return max(vmem_cap // 9, 1 << 20)


def _vmem_limit_bytes(vmem_cap):
    # ~96 MiB on v5e/v6e, ~48 MiB on v7x.
    return min((vmem_cap * 3) // 4, 112 << 20)


def _chunk_len(tb, tc):
    """Lanes per streamed chunk (multiple of 128), bounding the live chunk size."""
    ch = (_CHUNK_TARGET_ELEMS // max(1, tb * tc)) // 128 * 128
    return max(ch, 128)


# ---------------------------------------------------------------------------
# Tile planning
# ---------------------------------------------------------------------------
def _channel_tiles(C):
    """Channel tile candidates: C itself, or divisors of C that are multiples of 8."""
    tiles = [C]
    tiles += [d for d in range(C - (C % 8), 7, -8) if d < C and C % d == 0]
    return tiles


def _plan_main_tiles(B, C, HW, itemsize, target_bytes):
    """Pick (tb, tc) so the (tb, tc, HW) tile fits the budget, maximizing tile
    size subject to enough grid steps for pipelining / both v7x cores.
    Returns None when even the smallest admissible tile does not fit."""
    tcs = _channel_tiles(C)
    tbs = [d for d in range(B, 0, -1) if B % d == 0]

    max_steps = B * (C // min(tcs))
    problem_bytes = B * C * HW * itemsize
    goal = 1
    if max_steps >= 2:
        goal = 2
    if max_steps >= 4 and problem_bytes >= (8 << 20):
        goal = 4

    for need in (goal, 2, 1):
        best = None
        for tb in tbs:
            for tc in tcs:
                nbytes = tb * tc * HW * itemsize
                if nbytes > target_bytes:
                    continue
                if (B // tb) * (C // tc) < need:
                    continue
                if best is None or nbytes > best[0]:
                    best = (nbytes, tb, tc)
        if best is not None:
            return best[1], best[2]
    return None


def _plan_split_tiles(C, HW, itemsize, target_bytes):
    """HW-tiled fallback for large feature maps: (1, tc, thw) tiles."""
    tcs = _channel_tiles(C)
    fitting = [d for d in tcs if d * 128 * itemsize <= target_bytes]
    tc = max(fitting) if fitting else min(tcs)
    thw = max(128, (target_bytes // (tc * itemsize)) // 128 * 128)
    hw_pad = -(-HW // thw) * thw
    return tc, thw, hw_pad


# ---------------------------------------------------------------------------
# Streamed in-kernel helpers
# ---------------------------------------------------------------------------
def _partial_moments(x_ref, ch, shift=None):
    """Streamed sum and sum-of-squares of (x - shift) over the last axis.
    Returns two (tb, tc) float32 arrays; never binds more than one chunk."""
    tb, tc, hw = x_ref.shape
    n_full = hw // ch
    rem = hw - n_full * ch
    shift3 = None if shift is None else shift[:, :, None]

    def moments(xc):
        if shift3 is not None:
            xc = xc - shift3
        return jnp.sum(xc, axis=-1), jnp.sum(xc * xc, axis=-1)

    s = jnp.zeros((tb, tc), jnp.float32)
    ss = jnp.zeros((tb, tc), jnp.float32)
    if n_full > 0:
        def body(i, carry):
            acc_s, acc_ss = carry
            off = pl.multiple_of(i * ch, ch)
            ds_, dss = moments(x_ref[:, :, pl.ds(off, ch)].astype(jnp.float32))
            return acc_s + ds_, acc_ss + dss

        s, ss = lax.fori_loop(0, n_full, body, (s, ss), unroll=2)
    if rem > 0:
        ds_, dss = moments(x_ref[:, :, pl.ds(n_full * ch, rem)].astype(jnp.float32))
        s, ss = s + ds_, ss + dss
    return s, ss


def _apply_chunks(x_ref, o_ref, scale3, shift3, ch):
    """Streamed y = x * scale + shift over the last axis (scale3/shift3: (tb,tc,1) f32)."""
    tb, tc, hw = x_ref.shape
    n_full = hw // ch
    rem = hw - n_full * ch

    def store(off, size):
        xc = x_ref[:, :, pl.ds(off, size)].astype(jnp.float32)
        o_ref[:, :, pl.ds(off, size)] = (xc * scale3 + shift3).astype(o_ref.dtype)

    if n_full > 0:
        def body(i, carry):
            store(pl.multiple_of(i * ch, ch), ch)
            return carry

        lax.fori_loop(0, n_full, body, 0, unroll=2)
    if rem > 0:
        store(n_full * ch, rem)


# ---------------------------------------------------------------------------
# Kernels
# ---------------------------------------------------------------------------
def _cin_kernel(x_ref, g_ref, b_ref, o_ref, *, ch):
    """Per-(sample, channel) instance norm + style affine for one (tb, tc, HW) tile.
    g_ref/b_ref: resident (B, C) f32 table when the tile spans all channels,
    else a (tb, tc, 1) f32 block."""
    tb, tc, hw = x_ref.shape

    if len(g_ref.shape) == 2:  # resident full (B, C) table (tc == C)
        if tb == g_ref.shape[0]:
            g = g_ref[...]
            b = b_ref[...]
        else:
            b0 = pl.multiple_of(pl.program_id(0) * tb, tb)
            g = g_ref[pl.ds(b0, tb), :]
            b = b_ref[pl.ds(b0, tb), :]
    else:  # (tb, tc, 1) blocked params
        g = jnp.squeeze(g_ref[...], axis=-1)
        b = jnp.squeeze(b_ref[...], axis=-1)

    # Shifted streamed moments: use the mean of a leading window as the shift
    # so E[(x-m0)^2] - E[x-m0]^2 stays numerically benign (vs raw E[x^2]-mean^2).
    lead = min(ch, hw)
    x0 = x_ref[:, :, pl.ds(0, lead)].astype(jnp.float32)
    m0 = jnp.sum(x0, axis=-1) * (1.0 / lead)                      # (tb, tc)

    s, ss = _partial_moments(x_ref, ch, shift=m0)
    inv_n = 1.0 / hw
    d_mean = s * inv_n
    var = jnp.maximum(ss * inv_n - d_mean * d_mean, 0.0)          # biased (torch)
    rstd = lax.rsqrt(var + EPS)
    scale = g * rstd                                              # (tb, tc) f32
    shift = b - (m0 + d_mean) * scale
    _apply_chunks(x_ref, o_ref, scale[:, :, None], shift[:, :, None], ch)


def _stats_kernel(x_ref, mean_ref, rstd_ref, s_sc, ss_sc, *, ch, inv_n):
    """HW-tiled reduction: accumulate sum / sum-sq in VMEM scratch across the
    'arbitrary' HW grid axis; finalize mean / rstd on the last step."""
    h = pl.program_id(2)

    @pl.when(h == 0)
    def _init():
        s_sc[...] = jnp.zeros_like(s_sc)
        ss_sc[...] = jnp.zeros_like(ss_sc)

    s, ss = _partial_moments(x_ref, ch)
    s_sc[...] += s
    ss_sc[...] += ss

    @pl.when(h == pl.num_programs(2) - 1)
    def _finalize():
        mean = s_sc[...] * inv_n
        var = jnp.maximum(ss_sc[...] * inv_n - mean * mean, 0.0)
        mean_ref[...] = mean[:, :, None]
        rstd_ref[...] = lax.rsqrt(var + EPS)[:, :, None]


def _apply_kernel(x_ref, scale_ref, shift_ref, o_ref, *, ch):
    _apply_chunks(x_ref, o_ref, scale_ref[...], shift_ref[...], ch)


# ---------------------------------------------------------------------------
# Wrapper
# ---------------------------------------------------------------------------
def conditional_instance_norm2d(x, style_id, gamma, beta, *, tile_bytes=None):
    """x: (B, C, H, W); style_id: (B,) int; gamma/beta: (num_styles, C)."""
    B, C, H, W = x.shape
    HW = H * W
    itemsize = jnp.dtype(x.dtype).itemsize

    vmem_cap = _vmem_capacity_bytes()
    target = int(tile_bytes) if tile_bytes is not None else _tile_target_bytes(vmem_cap)
    vmem_limit = _vmem_limit_bytes(vmem_cap)

    # Lane-dense layout: spatial dims collapsed onto the lane axis.
    x3 = x.reshape(B, C, HW)

    # Per-sample affine params gathered from the tiny (S, C) table; kept in f32.
    style_id = style_id.astype(jnp.int32)
    g2 = jnp.take(gamma, style_id, axis=0).astype(jnp.float32)    # (B, C) f32
    b2 = jnp.take(beta, style_id, axis=0).astype(jnp.float32)     # (B, C) f32

    plan = _plan_main_tiles(B, C, HW, itemsize, target)
    if plan is not None:
        tb, tc = plan
        ch = _chunk_len(tb, tc)
        x_spec = pl.BlockSpec((tb, tc, HW), lambda i, j: (i, j, 0))
        if tc == C:
            # Whole (B, C) f32 param table resident in VMEM (fetched once,
            # no lane-padded per-step parameter blocks).
            params = (g2, b2)
            p_spec = pl.BlockSpec((B, C), lambda i, j: (0, 0))
        else:
            params = (g2[:, :, None], b2[:, :, None])
            p_spec = pl.BlockSpec((tb, tc, 1), lambda i, j: (i, j, 0))
        out3 = pl.pallas_call(
            functools.partial(_cin_kernel, ch=ch),
            out_shape=jax.ShapeDtypeStruct((B, C, HW), x.dtype),
            grid_spec=pltpu.PrefetchScalarGridSpec(
                num_scalar_prefetch=0,
                grid=(B // tb, C // tc),
                in_specs=[x_spec, p_spec, p_spec],
                out_specs=x_spec,
            ),
            compiler_params=pltpu.CompilerParams(
                dimension_semantics=("parallel", "parallel"),
                vmem_limit_bytes=vmem_limit,
            ),
        )(x3, *params)
        return out3.reshape(B, C, H, W)

    # ---- Large-H*W fallback: stats (HW reduction) pass + parallel apply pass ----
    tc, thw, hw_pad = _plan_split_tiles(C, HW, itemsize, target)
    ch = _chunk_len(1, tc)
    if hw_pad != HW:
        # Zero padding leaves sum / sum-sq unchanged; divide by the true HW.
        x3 = jnp.pad(x3, ((0, 0), (0, 0), (0, hw_pad - HW)))
    grid = (B, C // tc, hw_pad // thw)
    x_spec = pl.BlockSpec((1, tc, thw), lambda i, j, k: (i, j, k))
    stat_spec = pl.BlockSpec((1, tc, 1), lambda i, j, k: (i, j, 0))

    mean3, rstd3 = pl.pallas_call(
        functools.partial(_stats_kernel, ch=ch, inv_n=1.0 / HW),
        out_shape=(
            jax.ShapeDtypeStruct((B, C, 1), jnp.float32),
            jax.ShapeDtypeStruct((B, C, 1), jnp.float32),
        ),
        grid_spec=pltpu.PrefetchScalarGridSpec(
            num_scalar_prefetch=0,
            grid=grid,
            in_specs=[x_spec],
            out_specs=(stat_spec, stat_spec),
            scratch_shapes=[
                pltpu.VMEM((1, tc), jnp.float32),
                pltpu.VMEM((1, tc), jnp.float32),
            ],
        ),
        compiler_params=pltpu.CompilerParams(
            dimension_semantics=("parallel", "parallel", "arbitrary"),
            vmem_limit_bytes=vmem_limit,
        ),
    )(x3)

    # Fold the style affine into per-(sample, channel) scale / shift (tiny, f32).
    scale3 = g2[:, :, None] * rstd3
    shift3 = b2[:, :, None] - mean3 * scale3

    out3 = pl.pallas_call(
        functools.partial(_apply_kernel, ch=ch),
        out_shape=jax.ShapeDtypeStruct((B, C, hw_pad), x.dtype),
        grid_spec=pltpu.PrefetchScalarGridSpec(
            num_scalar_prefetch=0,
            grid=grid,
            in_specs=[x_spec, stat_spec, stat_spec],
            out_specs=x_spec,
        ),
        compiler_params=pltpu.CompilerParams(
            dimension_semantics=("parallel", "parallel", "parallel"),
            vmem_limit_bytes=vmem_limit,
        ),
    )(x3, scale3, shift3)
    if hw_pad != HW:
        out3 = out3[:, :, :HW]
    return out3.reshape(B, C, H, W)


# ---------------------------------------------------------------------------
# Pure-JAX reference (matches torch ConditionalInstanceNorm2d forward)
# ---------------------------------------------------------------------------
def _reference(x, style_id, gamma, beta):
    mean = jnp.mean(x, axis=(2, 3), keepdims=True)
    var = jnp.var(x, axis=(2, 3), keepdims=True)  # biased variance (torch)
    x_hat = (x - mean) / jnp.sqrt(var + EPS)
    g = gamma[style_id][:, :, None, None]
    b = beta[style_id][:, :, None, None]
    return x_hat * g + b


if __name__ == "__main__":
    B, C, H, W = 2, 4, 16, 16
    num_styles = 3

    key = jax.random.PRNGKey(0)
    kx, kg, kb = jax.random.split(key, 3)

    x = jax.random.normal(kx, (B, C, H, W), dtype=jnp.float32)
    gamma = 1.0 + 0.1 * jax.random.normal(kg, (num_styles, C), dtype=jnp.float32)
    beta = 0.1 * jax.random.normal(kb, (num_styles, C), dtype=jnp.float32)
    style_id = jnp.array([2, 0], dtype=jnp.int32)

    ref = _reference(x, style_id, gamma, beta)

    # Default (generation-aware) path.
    out = jax.block_until_ready(conditional_instance_norm2d(x, style_id, gamma, beta))
    assert out.shape == (B, C, H, W)
    assert jnp.allclose(out, ref, rtol=2e-5, atol=2e-5), "mismatch vs reference"

    # Exercise the large-H*W (HW-split stats + apply) path by forcing a tiny budget.
    out_split = jax.block_until_ready(
        conditional_instance_norm2d(x, style_id, gamma, beta, tile_bytes=2048))
    assert jnp.allclose(out_split, ref, rtol=2e-5, atol=2e-5), "split-path mismatch"

    # Exercise the channel-tiled main path (tc < C, blocked affine params).
    C2, H2, W2 = 16, 8, 8
    x2 = jax.random.normal(kx, (B, C2, H2, W2), dtype=jnp.float32)
    gamma2 = 1.0 + 0.1 * jax.random.normal(kg, (num_styles, C2), dtype=jnp.float32)
    beta2 = 0.1 * jax.random.normal(kb, (num_styles, C2), dtype=jnp.float32)
    ref2 = _reference(x2, style_id, gamma2, beta2)
    out2 = jax.block_until_ready(
        conditional_instance_norm2d(x2, style_id, gamma2, beta2, tile_bytes=2048))
    assert jnp.allclose(out2, ref2, rtol=2e-5, atol=2e-5), "channel-tiled mismatch"

    print("KERNEL_OK")
</pallas_src>

<mosaic_0001>
module attributes {stable_mosaic.version = 11 : i64} {
  func.func @_cin_kernel(%arg0: i32, %arg1: i32, %arg2: memref<1x4x256xf32, #tpu.memory_space<vmem>>, %arg3: memref<2x4xf32, #tpu.memory_space<vmem>>, %arg4: memref<2x4xf32, #tpu.memory_space<vmem>>, %arg5: memref<1x4x256xf32, #tpu.memory_space<vmem>>) attributes {dimension_semantics = [#tpu.dimension_semantics<parallel>, #tpu.dimension_semantics<parallel>], iteration_bounds = array<i64: 2, 1>, scalar_prefetch = 0 : i64, scratch_operands = 0 : i64, tpu.core_type = #tpu.core_type<tc>, window_params = [{transform_indices = @transform_0, window_bounds = array<i64: 1, 4, 256>}, {pipeline_mode = #tpu.pipeline_mode<synchronous>, transform_indices = @transform_1, window_bounds = array<i64: 2, 4>}, {pipeline_mode = #tpu.pipeline_mode<synchronous>, transform_indices = @transform_2, window_bounds = array<i64: 2, 4>}, {transform_indices = @transform_3, window_bounds = array<i64: 1, 4, 256>}]} {
    %c1_i32 = arith.constant 1 : i32
    %0 = arith.muli %arg0, %c1_i32 : i32
    %1 = tpu.assume_multiple %0, 1 : i32
    %2 = arith.index_cast %1 : i32 to index
    %c0 = arith.constant 0 : index
    %3 = vector.load %arg3[%2, %c0] : memref<2x4xf32, #tpu.memory_space<vmem>>, vector<1x4xf32>
    %4 = arith.index_cast %1 : i32 to index
    %c0_0 = arith.constant 0 : index
    %5 = vector.load %arg4[%4, %c0_0] : memref<2x4xf32, #tpu.memory_space<vmem>>, vector<1x4xf32>
    %c0_1 = arith.constant 0 : index
    %c0_2 = arith.constant 0 : index
    %c0_3 = arith.constant 0 : index
    %6 = vector.load %arg2[%c0_1, %c0_2, %c0_3] : memref<1x4x256xf32, #tpu.memory_space<vmem>>, vector<1x4x256xf32>
    %cst = arith.constant dense<0.000000e+00> : vector<1x4xf32>
    %7 = vector.multi_reduction <add>, %6, %cst [2] : vector<1x4x256xf32> to vector<1x4xf32>
    %cst_4 = arith.constant 3.906250e-03 : f32
    %8 = vector.broadcast %cst_4 : f32 to vector<1x4xf32>
    %9 = arith.mulf %7, %8 : vector<1x4xf32>
    %10 = vector.shape_cast %9 : vector<1x4xf32> to vector<1x4x1xf32>
    %cst_5 = arith.constant 0.000000e+00 : f32
    %11 = vector.broadcast %cst_5 : f32 to vector<1x4xf32>
    %cst_6 = arith.constant 0.000000e+00 : f32
    %12 = vector.broadcast %cst_6 : f32 to vector<1x4xf32>
    %c0_7 = arith.constant 0 : index
    %c0_8 = arith.constant 0 : index
    %c0_9 = arith.constant 0 : index
    %13 = vector.load %arg2[%c0_7, %c0_8, %c0_9] : memref<1x4x256xf32, #tpu.memory_space<vmem>>, vector<1x4x256xf32>
    %14 = vector.broadcast %10 : vector<1x4x1xf32> to vector<1x4x256xf32>
    %15 = arith.subf %13, %14 : vector<1x4x256xf32>
    %cst_10 = arith.constant dense<0.000000e+00> : vector<1x4xf32>
    %16 = vector.multi_reduction <add>, %15, %cst_10 [2] : vector<1x4x256xf32> to vector<1x4xf32>
    %17 = arith.mulf %15, %15 : vector<1x4x256xf32>
    %cst_11 = arith.constant dense<0.000000e+00> : vector<1x4xf32>
    %18 = vector.multi_reduction <add>, %17, %cst_11 [2] : vector<1x4x256xf32> to vector<1x4xf32>
    %19 = arith.addf %11, %16 : vector<1x4xf32>
    %20 = arith.addf %12, %18 : vector<1x4xf32>
    %cst_12 = arith.constant 3.906250e-03 : f32
    %21 = vector.broadcast %cst_12 : f32 to vector<1x4xf32>
    %22 = arith.mulf %19, %21 : vector<1x4xf32>
    %cst_13 = arith.constant 3.906250e-03 : f32
    %23 = vector.broadcast %cst_13 : f32 to vector<1x4xf32>
    %24 = arith.mulf %20, %23 : vector<1x4xf32>
    %25 = arith.mulf %22, %22 : vector<1x4xf32>
    %26 = arith.subf %24, %25 : vector<1x4xf32>
    %cst_14 = arith.constant 0.000000e+00 : f32
    %27 = vector.broadcast %cst_14 : f32 to vector<1x4xf32>
    %28 = arith.maximumf %26, %27 : vector<1x4xf32>
    %cst_15 = arith.constant 9.99999974E-6 : f32
    %29 = vector.broadcast %cst_15 : f32 to vector<1x4xf32>
    %30 = arith.addf %28, %29 : vector<1x4xf32>
    %31 = math.rsqrt %30 : vector<1x4xf32>
    %32 = arith.mulf %3, %31 : vector<1x4xf32>
    %33 = arith.addf %9, %22 : vector<1x4xf32>
    %34 = arith.mulf %33, %32 : vector<1x4xf32>
    %35 = arith.subf %5, %34 : vector<1x4xf32>
    %36 = vector.shape_cast %32 : vector<1x4xf32> to vector<1x4x1xf32>
    %37 = vector.shape_cast %35 : vector<1x4xf32> to vector<1x4x1xf32>
    %c0_16 = arith.constant 0 : index
    %c0_17 = arith.constant 0 : index
    %c0_18 = arith.constant 0 : index
    %38 = vector.load %arg2[%c0_16, %c0_17, %c0_18] : memref<1x4x256xf32, #tpu.memory_space<vmem>>, vector<1x4x256xf32>
    %39 = vector.broadcast %36 : vector<1x4x1xf32> to vector<1x4x256xf32>
    %40 = arith.mulf %38, %39 : vector<1x4x256xf32>
    %41 = vector.broadcast %37 : vector<1x4x1xf32> to vector<1x4x256xf32>
    %42 = arith.addf %40, %41 : vector<1x4x256xf32>
    %c0_19 = arith.constant 0 : index
    %c0_20 = arith.constant 0 : index
    %c0_21 = arith.constant 0 : index
    %43 = vector.load %arg5[%c0_19, %c0_20, %c0_21] : memref<1x4x256xf32, #tpu.memory_space<vmem>>, vector<1x4x256xf32>
    tpu.vector_store %arg5[%c0_19, %c0_20, %c0_21], %42 {strides = array<i32>} : memref<1x4x256xf32, #tpu.memory_space<vmem>>, vector<1x4x256xf32>,
    return
  }
  func.func @transform_0(%arg0: i32, %arg1: i32) -> (i32, i32, i32) {
    %c0_i32 = arith.constant 0 : i32
    %c0_i32_0 = arith.constant 0 : i32
    return %arg0, %arg1, %c0_i32 : i32, i32, i32
  }
  func.func @transform_1(%arg0: i32, %arg1: i32) -> (i32, i32) {
    %c0_i32 = arith.constant 0 : i32
    %c0_i32_0 = arith.constant 0 : i32
    %c0_i32_1 = arith.constant 0 : i32
    return %c0_i32, %c0_i32_0 : i32, i32
  }
  func.func @transform_2(%arg0: i32, %arg1: i32) -> (i32, i32) {
    %c0_i32 = arith.constant 0 : i32
    %c0_i32_0 = arith.constant 0 : i32
    %c0_i32_1 = arith.constant 0 : i32
    return %c0_i32, %c0_i32_0 : i32, i32
  }
  func.func @transform_3(%arg0: i32, %arg1: i32) -> (i32, i32, i32) {
    %c0_i32 = arith.constant 0 : i32
    %c0_i32_0 = arith.constant 0 : i32
    return %arg0, %arg1, %c0_i32 : i32, i32, i32
  }
}

</mosaic_0001>

<bundles_post_ra>
// kernel: tpu_custom_call.1
= control target key start
LH: loop header
LB: loop body
LE: loop exit
PB: predicated region body
PF: predicated region fallthrough
CT: control target
= control target key end

     0   :  { %8 = vsyncpa [#allocation3], 0  ;;  %s957_s0 = inlined_call_operand.hbm [shape: f32[2,4,256], index: 0, kind: input, shape index: {}]   ;;  %s958_s1 = inlined_call_operand.hbm [shape: f32[2,4], index: 1, kind: input, shape index: {}]   ;;  %s959_s2 = inlined_call_operand.hbm [shape: f32[2,4], index: 2, kind: input, shape index: {}]   ;;  %s960_s3 = inlined_call_operand.hbm [shape: f32[2,4,256], index: 3, kind: output, shape index: {}]  }
   0x1   :  { %10 = vsyncpa [#allocation3 + $0x1], 0 }
   0x2   :  { %11 = vsyncpa [#allocation6], 0 }
   0x3   :  { %12 = vsyncpa [#allocation4], 0 }
   0x4   :  { %14 = vsyncpa [#allocation4 + $0x1], 0  ;;  %s793_s12 = smov 0   ;;  %s795_s13 = smov 0  }
   0x5   :  { %s797_s14 = smov 0   ;;  %s799_s15 = smov 0  }
   0x6   :  { %s801_s16 = smov 0   ;;  %s803_s17 = smov 0  }
   0x7 LB: > { %s479_s18 = sadd.s32 4294967295, %s767_s17   ;;  %s480_s19 = sadd.s32 4294967294, %s767_s17   ;;  %s767_s17 = sphi %s803_s17, %s20_s17   ;;  %s763_s16 = sphi %s801_s16, %s970_s16   ;;  %s759_s15 = sphi %s799_s15, %s969_s15   ;;  %s755_s14 = sphi %s797_s14, %s968_s14   ;;  %s751_s13 = sphi %s795_s13, %s967_s13   ;;  %s747_s12 = sphi %s793_s12, %s966_s12  }
   0x8   : > { %p54_p0 = scmp.ne.s32.totalorder %s751_s13, %s747_s12  ;;  %p827_p1 = scmp.eq.s32.totalorder %s479_s18, 0 }
   0x9   : > { %p128_p2 = scmp.eq.s32.totalorder %s480_s19, 1  ;;  %p481_p4 = scmp.ge.s32.totalorder %s767_s17, 1 }
   0xa   : > { %p833_p3 = por %p827_p1, %p54_p0  ;;  %p135_p6 = scmp.lt.s32.totalorder %s767_s17, 3 }
   0xb   : > { %p838_p5 = por %p128_p2, %p54_p0  ;;  %s147_s25 = sshll.u32 %s958_s1, 4  ;;  %s148_s25 = int_to_ptr.hbm [resolvable:$true] %s147_s25 }
   0xc   : > { %p846_p7 = pnand %p481_p4, %p135_p6  ;;  %p484_p8 = scmp.ge.s32.totalorder %s767_s17, 2 }
   0xd   : > { %s769_s27 = smov [#allocation5]   ;;  %s159_s4 = sshll.u32 %s959_s2, 4  ;;  %s160_s4 = int_to_ptr.hbm [resolvable:$true] %s159_s4 }
   0xe   : > { %p512_p9 = pneg %p846_p7  ;;  %s149_s28 = sshll.u32 %s769_s27, 4  ;;  %s150_s28 = int_to_ptr.vmem [resolvable:$true] %s149_s28 }
   0xf   : > { %s770_s5 = smov [#allocation7]   ;;  %p122_p11 = scmp.eq.s32.totalorder %s479_s18, 1 }
  0x10   : > { %p513_p10 = pnand %p512_p9, %p827_p1  ;;  %s161_s6 = sshll.u32 %s770_s5, 4  ;;  %s162_s6 = int_to_ptr.vmem [resolvable:$true] %s161_s6 }
  0x11   : > { %s32_s7 = sadd.s32 1, %s763_s16  ;;  %s41_s8 = sadd.s32 1, %s755_s14 }
  0x12   : > { %515 = dma.hbm_to_vmem [thread:$0]  (!%p513_p10), %s148_s25, 32, %s150_s28, [#allocation6]  }
  0x13   : > { %518 = dma.hbm_to_vmem [thread:$0]  (!%p513_p10), %s160_s4, 32, %s162_s6, [#allocation6]  }
  0x14   : > { %p34_p12 = scmp.ge.s32.totalorder %s32_s7, 2  ;;  %p48_p13 = scmp.ne.s32.totalorder %s755_s14, %s751_s13 }
  0x15   : > { %p49_p0 = scmp.eq.s32.totalorder %s767_s17, 0  ;;  %p529_p4 = scmp.lt.s32.totalorder %s767_s17, 2 }
  0x16   : > { %s972_s7 = smov (%p34_p12, %s32_s7), 0  ;;  %p865_p2 = por %p122_p11, %p48_p13 }
  0x17   : > { %s36_s10 = ssub.s32 %s763_s16, %s972_s7  ;;  %s172_s11 = sand.u32 1, %s755_s14  }
  0x18   : > { %p39_p6 = scmp.eq.s32.totalorder %s36_s10, 0  ;;  %p50_p9 = por %p49_p0, %p48_p13 }
  0x19   : > { %s485_s19 = sshll.u32 %s172_s11, 3  ;;  %s498_s18 = sshll.u32 %s763_s16, 3 }
  0x1a   : > { %s875_s23 = scalar_select %p39_p6, %s755_s14, %s41_s8  }
  0x1b   : > { %s183_s27 = scalar_lea.hbm %s957_s0, %s498_s18  ;;  %s176_s29 = scalar_lea.vmem [#allocation2], %s485_s19 }
  0x1c   : > { %s185_s28 = sshll.u32 %s183_s27, 4  ;;  %s187_s30 = sshll.u32 %s176_s29, 4  ;;  %s186_s28 = int_to_ptr.hbm [resolvable:$true] %s185_s28  ;;  %s188_s30 = int_to_ptr.vmem [resolvable:$true] %s187_s30 }
  0x1d   : > { %p520_p10 = pnand %p529_p4, %p50_p9  ;;  %s173_s4 = scalar_lea.sflag [#allocation3], %s172_s11 }
  0x1e   : > { %196 = sbr.rel (%p846_p7) target bundleno = 675 (0x2a3), region = 32  ;;  %s885_s5 = sand.u32 (!%p846_p7), 1, %s751_s13  }
  0x1f   : > { %522 = dma.hbm_to_vmem [thread:$0]  (!%p520_p10), %s186_s28, 128, %s188_s30, %s173_s4  }
  0x20   : > { %s489_s6 = sshll.u32 (!%p846_p7), %s885_s5, 3  ;;  %s199_s8 = scalar_lea.sflag (!%p846_p7), [#allocation3], %s885_s5 }
  0x21   : > { %s202_s10 = scalar_lea.vmem (!%p846_p7), [#allocation2], %s489_s6 }
  0x23   : > { %734 = dma.done.wait (%p833_p3), %s199_s8, 128  }
  0x24   : > { %736 = vsyncadd (%p833_p3), %s199_s8, 4294967168 }
  0x25   : > { %738 = dma.done.wait (%p827_p1), [#allocation6], 64  }
  0x26   : > { %740 = vsyncadd (%p827_p1), [#allocation6], 4294967232  ;;  %v899_v0 = vld [vmem:[%s202_s10] sm:$0xff]  ;;  %vm247_vm0 = vcmask 1043456   ;;  %v771_v6 = vmov 839922192   ;;  %v303_v24 = vlaneseq }
  0x27   : > { %242 = vst [vmem:[#allocation1] ss:$2 sm:$0xff] %v899_v0  ;;  %v256_v7 = vunpack.c.l.s4 %v771_v6  ;;  %s236_s20 = scalar_lea.vmem [#allocation5], %s759_s15  ;;  %v772_v46 = vmov 0   ;;  %s238_s21 = scalar_lea.vmem [#allocation7], %s759_s15 }
  0x28   : > { %v312_v25 = vshrl.u32 %v303_v24, 7  ;;  %v304_v39 = vand.u32 127, %v303_v24  ;;  %v237_v41 = vld [vmem:[%s236_s20] sm:$0x1]  ;;  %586 = vset.pattern.permute.xlu2 %v772_v46  ;;  %s499_s26 = sshll.u32 %s759_s15, 3  ;;  %s235_s24 = scalar_lea.vmem [#allocation8], %s489_s6 }
  0x29   : > { %v904_v8 = vunpack.c.0.s8 %v256_v7  ;;  %v239_v50 = vld [vmem:[%s238_s21] sm:$0x1]  ;;  %s369_s18 = scalar_lea.hbm %s960_s3, %s499_s26  ;;  %s371_s25 = sshll.u32 %s235_s24, 4  ;;  %s372_s25 = int_to_ptr.vmem [resolvable:$true] %s371_s25 }
  0x2a   : > { %585 = vset.pattern.permute.xlu1 %v312_v25  ;;  %588 = vset.pattern.permute.xlu0 %v312_v25  ;;  %s373_s27 = sshll.u32 %s369_s18, 4  ;;  %s356_s15 = scalar_lea.sflag [#allocation4], %s885_s5  ;;  %s374_s27 = int_to_ptr.hbm [resolvable:$true] %s373_s27 }
  0x2b   : > { %s695_s28 = sshra.s32 %s374_s27, 4  ;;  %s701_s6 = scalar_lea.hbm %s960_s3, 16  ;;  %s696_s28 = int_to_ptr.hbm [resolvable:$true] %s695_s28 }
  0x2c   : > { %s697_s29 = scalar_lea.hbm %s696_s28, 8  ;;  %p702_p11 = scmp.lt.s32.totalorder %s696_s28, %s960_s3 }
  0x2d   : > { %p698_p1 = scmp.ne.s32.totalorder %s696_s28, %s697_s29  ;;  %p703_p12 = scmp.lt.s32.totalorder %s701_s6, %s697_s29 }
  0x2e   : > { %v243_v1 = vld.sshfl [vmem:[#allocation1] sm:$0xff pattern:$0x75316420]  ;;  %v244_v2 = vld.sshfl [vmem:[#allocation1 + $0x8] sm:$0xff pattern:$0x75316420] }
  0x2f   : > { %v248_v3 = vsel %vm247_vm0, %v243_v1, 0.0  ;;  %v249_v4 = vsel %vm247_vm0, %v244_v2, 0.0  ;;  %p699_p3 = pnand %p698_p1, %p865_p2  ;;  %p704_p13 = por %p703_p12, %p702_p11 }
  0x30   : > { %v250_v5 = vadd.f32 %v249_v4, %v248_v3 }
  0x31   : > { %p700_p7 = pneg %p699_p3 }
  0x32   : > { %251 = vadd.xlane.f32.xlu0 %v250_v5 }
  0x33   : > { %p705_p0 = pnand %p704_p13, %p700_p7 }
  0xa5   : > { %v252_v9 = vpop.xlane.xlu0 %251 }
  0xa6   : > { %v253_v10 = vmul.f32 0.00390625, %v252_v9 }
  0xa8   : > { %v258_v11 = vperm.slane %v253_v10, %v904_v8 }
  0xaa   : > { %v260_v12 = vsub.f32 %v899_v0, %v258_v11 }
  0xac   : > { %262 = vst [vmem:[#allocation1] ss:$2 sm:$0xff] %v260_v12  ;;  %v272_v13 = vmul.f32 %v260_v12, %v260_v12 }
  0xb3   : > { %v263_v14 = vld.sshfl [vmem:[#allocation1] sm:$0xff pattern:$0x75316420]  ;;  %v264_v15 = vld.sshfl [vmem:[#allocation1 + $0x8] sm:$0xff pattern:$0x75316420] }
  0xb4   : > { %v267_v16 = vsel %vm247_vm0, %v263_v14, 0.0  ;;  %v268_v17 = vsel %vm247_vm0, %v264_v15, 0.0  ;;  %274 = vst [vmem:[#allocation1] ss:$2 sm:$0xff] %v272_v13 }
  0xb5   : > { %v269_v18 = vadd.f32 %v268_v17, %v267_v16 }
  0xb7   : > { %270 = vadd.xlane.f32.xlu0 %v269_v18 }
  0xbb   : > { %v275_v19 = vld.sshfl [vmem:[#allocation1] sm:$0xff pattern:$0x75316420]  ;;  %v276_v20 = vld.sshfl [vmem:[#allocation1 + $0x8] sm:$0xff pattern:$0x75316420] }
  0xbc   : > { %v279_v21 = vsel %vm247_vm0, %v275_v19, 0.0  ;;  %v280_v22 = vsel %vm247_vm0, %v276_v20, 0.0 }
  0xbd   : > { %v281_v23 = vadd.f32 %v280_v22, %v279_v21 }
  0xbf   : > { %282 = vadd.xlane.f32.xlu1 %v281_v23 }
 0x12a   : > { %v271_v26 = vpop.xlane.xlu0 %270 }
 0x12b   : > { %v286_v27 = vmul.f32 0.00390625, %v271_v26 }
 0x12d   : > { %v288_v29 = vmul.f32 %v286_v27, %v286_v27  ;;  %v308_v47 = vadd.f32 %v286_v27, %v253_v10 }
 0x132   : > { %v283_v28 = vpop.xlane.xlu1 %282 }
 0x133   : > { %v287_v30 = vmul.f32 0.00390625, %v283_v28 }
 0x135   : > { %v289_v31 = vsub.f32 %v287_v30, %v288_v29 }
 0x137   : > { %v290_v32 = vmax.f32 %v289_v31, 0.0 }
 0x139   : > { %v291_v33 = vadd.f32 1e-05, %v290_v32 }
 0x13b   : > { %589 = vrsqrt.f32 %v291_v33  ;;  %vm298_vm2 = vweird.f32 %v291_v33 }
 0x141   : > { %v590_v34 = vpop.eup %589 }
 0x142   : > { %v293_v35 = vmul.f32 %v590_v34, %v291_v33  ;;  %vm299_vm1 = vweird.f32 %v590_v34 }
 0x143   : > { %vm300_vm3 = vmor %vm298_vm2, %vm299_vm1 }
 0x144   : > { %v294_v36 = vmul.f32 %v590_v34, %v293_v35 }
 0x146   : > { %v295_v37 = vmul.f32 0.5, %v294_v36 }
 0x148   : > { %v296_v38 = vsub.f32 1.5, %v295_v37 }
 0x14a   : > { %v297_v40 = vmul.f32 %v590_v34, %v296_v38 }
 0x14c   : > { %v301_v42 = vsel %vm300_vm3, %v590_v34, %v297_v40 }
 0x14d   : > { %v305_v43 = vperm.slane %v301_v42, %v304_v39 }
 0x14f   : > { %v307_v44 = vmul.f32 %v305_v43, %v237_v41 }
 0x151   : > { %v310_v45 = vperm.slane %v307_v44, 0 }
 0x153   : > { %315 = vperm.xlu1 %585, %v310_v45  }
 0x1c5   : > { %v316_v48 = vpop.permute.xlu1 %315 }
 0x1c6   : > { %v318_v49 = vmul.f32 %v316_v48, %v308_v47 }
 0x1c8   : > { %321 = vperm.xlu2 %586, %v318_v49  }
 0x1d0   : > { %587 = vset.pattern.permute.xlu2 %v312_v25 }
 0x1d8   : > { %331 = vperm.xlu2 %587, %v310_v45  }
 0x222   : > { %v322_v51 = vpop.permute.xlu2 %321 }
 0x223   : > { %v323_v52 = vperm.slane %v322_v51, %v304_v39 }
 0x225   : > { %v325_v53 = vsub.f32 %v239_v50, %v323_v52 }
 0x227   : > { %v333_v54 = vperm.slane %v325_v53, 0 }
 0x229   : > { %338 = vperm.xlu0 %588, %v333_v54  }
 0x232   : > { %v332_v55 = vpop.permute.xlu2 %331 }
 0x233   : > { %v344_v56 = vperm.slane %v332_v55, %v904_v8 }
 0x235   : > { %v346_v58 = vmul.f32 %v344_v56, %v899_v0 }
 0x29b   : > { %v339_v57 = vpop.permute.xlu0 %338 }
 0x29c   : > { %v351_v59 = vperm.slane %v339_v57, %v904_v8 }
 0x29e   : > { %v353_v60 = vadd.f32 %v351_v59, %v346_v58 }
 0x2a0   : > { %354 = vst [vmem:[%s235_s24] sm:$0xff] %v353_v60 }
 0x2a1   : > { %708 = shalt.err (!%p705_p0)
}
 0x2a2   : > { %510 = dma.vmem_to_hbm [thread:$0]  (%p865_p2), %s372_s25, 128, %s374_s27, %s356_s15  }
 0x2a3 PF: > { %s385_s5 = sand.u32 1, %s747_s12   ;;  %p524_p4 = pnand %p484_p8, %p838_p5 }
 0x2a4   : > { %s386_s20 = scalar_lea.sflag [#allocation4], %s385_s5 }
 0x2a5   : > { %p525_p6 = pneg %p524_p4 }
 0x2a7   : > { %742 = dma.done.wait (%p525_p6), %s386_s20, 128  }
 0x2a8   : > { %744 = vsyncadd (%p525_p6), %s386_s20, 4294967168  ;;  %s20_s17 = sadd.s32 1, %s767_s17   ;;  %s966_s12 = smov %s751_s13 }
 0x2a9   : > { %p17_p9 = scmp.ge.s32.totalorder %s20_s17, 4   ;;  %s967_s13 = smov %s755_s14 }
 0x2aa   : > { %s968_s14 = smov %s875_s23  ;;  %s969_s15 = smov %s763_s16 }
 0x2ab   : > { %s970_s16 = smov %s972_s7  ;;  %19 = sbr.rel (!%p17_p9) target bundleno = 7 (0x7), region = 87 }
 0x2b0   :  { %392 = vsyncpa [#allocation3], 1 }
 0x2b1   :  { %394 = vsyncpa [#allocation3 + $0x1], 1 }
 0x2b2   :  { %395 = vsyncpa [#allocation6], 1 }
 0x2b3   :  { %396 = vsyncpa [#allocation4], 1 }
 0x2b4   :  { %398 = vsyncpa [#allocation4 + $0x1], 1 }

</bundles_post_ra>
